<compile_context>
chip_gen: v7x
topology: tpu7x:2x2x1
jax: 0.10.0
libtpu: 0.0.40
codegen_flags: <defaults>
</compile_context>

<pallas_src>
import jax
import jax.numpy as jnp
from jax.experimental import pallas as pl
from jax.experimental.pallas import tpu as pltpu


_LANE = 128


def _round_up(x, m):
    return ((x + m - 1) // m) * m


# ----------------------------------------------------------------------------
# Fused MLP kernel.  Grid = (mc_sample, layer).
#   x_ref block : (B, F)        padded input (same block every step, resident)
#   w_ref block : (1, 1, F, F)  sampled weight for (mc, layer), pre-transposed
#   b_ref block : (1, 1, 1, F)  sampled bias for (mc, layer)
#   o_ref block : (1, B, F)     indexed by mc only -> stays VMEM-resident
#                               across the layer axis and acts as the
#                               activation buffer.
# ----------------------------------------------------------------------------
def _fused_mlp_kernel(x_ref, w_ref, b_ref, o_ref):
    l = pl.program_id(1)
    last = pl.num_programs(1) - 1

    # First layer of this MC sample: bring the (padded) input into the
    # resident output/activation block.
    @pl.when(l == 0)
    def _():
        o_ref[0] = x_ref[...]

    h = o_ref[0]                      # (B, F) float32 activation
    w = w_ref[0, 0]                   # (F, F) bf16, already (in, out)
    b = b_ref[0, 0]                   # (1, F) float32

    y = jnp.dot(h.astype(w.dtype), w, preferred_element_type=jnp.float32) + b

    # ReLU on all layers except the last one.
    o_ref[0] = jnp.where(l < last, jnp.maximum(y, 0.0), y)


# ----------------------------------------------------------------------------
# Parameter init (replicates muParameter / rhoParameter, BayesianNetwork_init=False)
# ----------------------------------------------------------------------------
def init_bayesian_network(key, architecture):
    params = []
    depth = len(architecture)
    for layer in range(depth - 1):
        in_f, out_f = int(architecture[layer]), int(architecture[layer + 1])
        key, k1, k2, k3, k4 = jax.random.split(key, 5)
        bound = (1.0 / in_f) ** 0.5
        mu_w = jax.random.uniform(k1, (out_f, in_f), jnp.float32, -bound, bound)
        mu_b = jax.random.uniform(k2, (out_f,), jnp.float32, -bound, bound)
        rho_w = jax.random.uniform(k3, (out_f, in_f), jnp.float32, -5.0, -4.0)
        rho_b = jax.random.uniform(k4, (out_f,), jnp.float32, -5.0, -4.0)
        params.append(dict(mu_w=mu_w, mu_b=mu_b, rho_w=rho_w, rho_b=rho_b))
    return params


# ----------------------------------------------------------------------------
# Per-forward-call sampling (Gaussian_dropconnect.sample), done in plain JAX.
# Returns padded, pre-transposed, packed weights/biases for n_mc MC samples.
# ----------------------------------------------------------------------------
def sample_network_weights(key, params, p, n_mc):
    n_layers = len(params)
    dims = [params[0]["mu_w"].shape[1]] + [lp["mu_w"].shape[0] for lp in params]
    F = _round_up(max(dims), _LANE)

    w_layers, b_layers = [], []
    for layer, lp in enumerate(params):
        out_f, in_f = lp["mu_w"].shape
        sigma_w = jax.nn.softplus(lp["rho_w"])          # log1p(exp(rho)), stable
        sigma_b = jax.nn.softplus(lp["rho_b"])

        # First and last layers use keep_p = 1, middle layers keep_p = p.
        keep_p = 1.0 if (layer == 0 or layer == n_layers - 1) else float(p)

        key, ke_w, ke_b, km_w, km_b = jax.random.split(key, 5)
        eps_w = jax.random.normal(ke_w, (n_mc, out_f, in_f), jnp.float32)
        eps_b = jax.random.normal(ke_b, (n_mc, out_f), jnp.float32)

        if keep_p >= 1.0:
            # keep_p == 1: mask is all-ones -> skip Bernoulli generation entirely.
            masked_mu_w = jnp.broadcast_to(lp["mu_w"], (n_mc, out_f, in_f))
            masked_mu_b = jnp.broadcast_to(lp["mu_b"], (n_mc, out_f))
        else:
            mask_w = jax.random.bernoulli(km_w, keep_p, (n_mc, out_f, in_f))
            mask_b = jax.random.bernoulli(km_b, keep_p, (n_mc, out_f))
            # select instead of mask-as-float multiply
            masked_mu_w = jnp.where(mask_w, lp["mu_w"], 0.0)
            masked_mu_b = jnp.where(mask_b, lp["mu_b"], 0.0)

        w = masked_mu_w + sigma_w * eps_w               # (n_mc, out_f, in_f)
        b = masked_mu_b + sigma_b * eps_b               # (n_mc, out_f)

        # Pre-transpose to (in, out), pad to lane-dense (F, F), store bf16.
        w_t = jnp.transpose(w, (0, 2, 1))
        w_pad = (jnp.zeros((n_mc, F, F), jnp.bfloat16)
                 .at[:, :in_f, :out_f].set(w_t.astype(jnp.bfloat16)))
        b_pad = (jnp.zeros((n_mc, 1, F), jnp.float32)
                 .at[:, 0, :out_f].set(b))

        w_layers.append(w_pad)
        b_layers.append(b_pad)

    w_packed = jnp.stack(w_layers, axis=1)   # (n_mc, L, F, F) bf16
    b_packed = jnp.stack(b_layers, axis=1)   # (n_mc, L, 1, F) f32
    return w_packed, b_packed, F


# ----------------------------------------------------------------------------
# BayesianNetwork.forward for n_mc Monte-Carlo samples, one fused pallas_call.
# ----------------------------------------------------------------------------
def bayesian_network_forward(w_packed, b_packed, x, out_features):
    n_mc, n_layers, F, _ = w_packed.shape
    B, in_f = x.shape
    x_pad = jnp.zeros((B, F), jnp.float32).at[:, :in_f].set(x.astype(jnp.float32))

    out = pl.pallas_call(
        _fused_mlp_kernel,
        out_shape=jax.ShapeDtypeStruct((n_mc, B, F), jnp.float32),
        grid_spec=pl.GridSpec(
            grid=(n_mc, n_layers),
            in_specs=[
                pl.BlockSpec((B, F), lambda m, l: (0, 0)),            # input (resident)
                pl.BlockSpec((1, 1, F, F), lambda m, l: (m, l, 0, 0)),  # weights
                pl.BlockSpec((1, 1, 1, F), lambda m, l: (m, l, 0, 0)),  # biases
            ],
            out_specs=pl.BlockSpec((1, B, F), lambda m, l: (m, 0, 0)),
        ),
        compiler_params=pltpu.CompilerParams(
            dimension_semantics=("parallel", "arbitrary")),  # MC samples parallel,
                                                             # layers sequential
    )(x_pad, w_packed, b_packed)

    return out[:, :, :out_features]


# Pure-JAX reference of the fused forward (same padded/sampled weights).
def _reference_forward(w_packed, b_packed, x_pad, out_features):
    n_mc, n_layers, F, _ = w_packed.shape
    outs = []
    for m in range(n_mc):
        h = x_pad
        for l in range(n_layers):
            y = jnp.dot(h.astype(w_packed.dtype), w_packed[m, l],
                        preferred_element_type=jnp.float32) + b_packed[m, l, 0]
            h = jnp.maximum(y, 0.0) if l < n_layers - 1 else y
        outs.append(h)
    return jnp.stack(outs)[:, :, :out_features]


if __name__ == "__main__":
    # Small MLP consistent with the module: architecture = [in, h1, h2, out]
    architecture = (32, 64, 64, 16)
    batch = 8
    p_keep = 0.5
    n_mc = 4                     # Monte-Carlo forward samples, fused in one call

    root = jax.random.PRNGKey(0)
    k_params, k_input, k_sample = jax.random.split(root, 3)

    params = init_bayesian_network(k_params, architecture)
    x = jax.random.normal(k_input, (batch, architecture[0]), jnp.float32)

    # One forward call: sample weights, then run the fused Pallas MLP.
    w_packed, b_packed, F = sample_network_weights(k_sample, params, p_keep, n_mc)
    out = bayesian_network_forward(w_packed, b_packed, x,
                                   out_features=architecture[-1])
    out = jax.block_until_ready(out)

    assert out.shape == (n_mc, batch, architecture[-1]), out.shape
    assert bool(jnp.all(jnp.isfinite(out)))
    assert bool(jnp.any(jnp.abs(out) > 0))

    # Correctness vs. pure-JAX reference on the same sampled weights.
    x_pad = jnp.zeros((batch, F), jnp.float32).at[:, :architecture[0]].set(x)
    ref = _reference_forward(w_packed, b_packed, x_pad, architecture[-1])
    max_err = float(jnp.max(jnp.abs(out - ref)))
    assert max_err < 1e-2, f"max_err={max_err}"

    print("KERNEL_OK")
</pallas_src>

<mosaic_0001>
module attributes {stable_mosaic.version = 11 : i64} {
  func.func @_fused_mlp_kernel(%arg0: i32, %arg1: i32, %arg2: memref<8x128xf32, #tpu.memory_space<vmem>>, %arg3: memref<1x1x128x128xbf16, #tpu.memory_space<vmem>>, %arg4: memref<1x1x1x128xf32, #tpu.memory_space<vmem>>, %arg5: memref<1x8x128xf32, #tpu.memory_space<vmem>>) attributes {dimension_semantics = [#tpu.dimension_semantics<parallel>, #tpu.dimension_semantics<arbitrary>], iteration_bounds = array<i64: 4, 3>, scalar_prefetch = 0 : i64, scratch_operands = 0 : i64, tpu.core_type = #tpu.core_type<tc>, window_params = [{pipeline_mode = #tpu.pipeline_mode<synchronous>, transform_indices = @transform_0, window_bounds = array<i64: 8, 128>}, {transform_indices = @transform_1, window_bounds = array<i64: 1, 1, 128, 128>}, {transform_indices = @transform_2, window_bounds = array<i64: 1, 1, 1, 128>}, {transform_indices = @transform_3, window_bounds = array<i64: 1, 8, 128>}]} {
    %c0_i32 = arith.constant 0 : i32
    %0 = arith.cmpi eq, %arg1, %c0_i32 : i32
    %1 = arith.extui %0 : i1 to i32
    %c0_i32_0 = arith.constant 0 : i32
    %2 = arith.cmpi ne, %1, %c0_i32_0 : i32
    scf.if %2 {
      %c0_15 = arith.constant 0 : index
      %c0_16 = arith.constant 0 : index
      %20 = vector.load %arg2[%c0_15, %c0_16] : memref<8x128xf32, #tpu.memory_space<vmem>>, vector<8x128xf32>
      %c0_17 = arith.constant 0 : index
      %c0_18 = arith.constant 0 : index
      %c0_19 = arith.constant 0 : index
      %21 = vector.load %arg5[%c0_17, %c0_18, %c0_19] : memref<1x8x128xf32, #tpu.memory_space<vmem>>, vector<1x8x128xf32>
      %22 = vector.shape_cast %21 : vector<1x8x128xf32> to vector<8x128xf32>
      %23 = vector.shape_cast %20 : vector<8x128xf32> to vector<1x8x128xf32>
      tpu.vector_store %arg5[%c0_17, %c0_18, %c0_19], %23 {strides = array<i32>} : memref<1x8x128xf32, #tpu.memory_space<vmem>>, vector<1x8x128xf32>,
    } else {
    }
    %c0 = arith.constant 0 : index
    %c0_1 = arith.constant 0 : index
    %c0_2 = arith.constant 0 : index
    %3 = vector.load %arg5[%c0, %c0_1, %c0_2] : memref<1x8x128xf32, #tpu.memory_space<vmem>>, vector<1x8x128xf32>
    %4 = vector.shape_cast %3 : vector<1x8x128xf32> to vector<8x128xf32>
    %c0_3 = arith.constant 0 : index
    %c0_4 = arith.constant 0 : index
    %c0_5 = arith.constant 0 : index
    %c0_6 = arith.constant 0 : index
    %5 = vector.load %arg3[%c0_3, %c0_4, %c0_5, %c0_6] : memref<1x1x128x128xbf16, #tpu.memory_space<vmem>>, vector<1x1x128x128xbf16>
    %6 = vector.shape_cast %5 : vector<1x1x128x128xbf16> to vector<128x128xbf16>
    %c0_7 = arith.constant 0 : index
    %c0_8 = arith.constant 0 : index
    %c0_9 = arith.constant 0 : index
    %c0_10 = arith.constant 0 : index
    %7 = vector.load %arg4[%c0_7, %c0_8, %c0_9, %c0_10] : memref<1x1x1x128xf32, #tpu.memory_space<vmem>>, vector<1x1x1x128xf32>
    %8 = vector.shape_cast %7 : vector<1x1x1x128xf32> to vector<1x128xf32>
    %9 = arith.truncf %4 : vector<8x128xf32> to vector<8x128xbf16>
    %cst = arith.constant dense<0.000000e+00> : vector<8x128xf32>
    %10 = tpu.matmul %9, %6, %cst {dimension_numbers = #tpu.dot_dimension_numbers<[1], [0], [0], [1], [0, 0, 1, 1], [], []>} : vector<8x128xbf16>, vector<128x128xbf16>, vector<8x128xf32> -> vector<8x128xf32>
    %11 = vector.broadcast %8 : vector<1x128xf32> to vector<8x128xf32>
    %12 = arith.addf %10, %11 : vector<8x128xf32>
    %c2_i32 = arith.constant 2 : i32
    %13 = arith.cmpi slt, %arg1, %c2_i32 : i32
    %cst_11 = arith.constant 0.000000e+00 : f32
    %14 = vector.broadcast %cst_11 : f32 to vector<8x128xf32>
    %15 = arith.maximumf %12, %14 : vector<8x128xf32>
    %16 = arith.select %13, %15, %12 : vector<8x128xf32>
    %c0_12 = arith.constant 0 : index
    %c0_13 = arith.constant 0 : index
    %c0_14 = arith.constant 0 : index
    %17 = vector.load %arg5[%c0_12, %c0_13, %c0_14] : memref<1x8x128xf32, #tpu.memory_space<vmem>>, vector<1x8x128xf32>
    %18 = vector.shape_cast %17 : vector<1x8x128xf32> to vector<8x128xf32>
    %19 = vector.shape_cast %16 : vector<8x128xf32> to vector<1x8x128xf32>
    tpu.vector_store %arg5[%c0_12, %c0_13, %c0_14], %19 {strides = array<i32>} : memref<1x8x128xf32, #tpu.memory_space<vmem>>, vector<1x8x128xf32>,
    return
  }
  func.func @transform_0(%arg0: i32, %arg1: i32) -> (i32, i32) {
    %c0_i32 = arith.constant 0 : i32
    %c0_i32_0 = arith.constant 0 : i32
    %c0_i32_1 = arith.constant 0 : i32
    return %c0_i32, %c0_i32_0 : i32, i32
  }
  func.func @transform_1(%arg0: i32, %arg1: i32) -> (i32, i32, i32, i32) {
    %c0_i32 = arith.constant 0 : i32
    %c0_i32_0 = arith.constant 0 : i32
    %c0_i32_1 = arith.constant 0 : i32
    return %arg0, %arg1, %c0_i32, %c0_i32_0 : i32, i32, i32, i32
  }
  func.func @transform_2(%arg0: i32, %arg1: i32) -> (i32, i32, i32, i32) {
    %c0_i32 = arith.constant 0 : i32
    %c0_i32_0 = arith.constant 0 : i32
    %c0_i32_1 = arith.constant 0 : i32
    return %arg0, %arg1, %c0_i32, %c0_i32_0 : i32, i32, i32, i32
  }
  func.func @transform_3(%arg0: i32, %arg1: i32) -> (i32, i32, i32) {
    %c0_i32 = arith.constant 0 : i32
    %c0_i32_0 = arith.constant 0 : i32
    %c0_i32_1 = arith.constant 0 : i32
    return %arg0, %c0_i32, %c0_i32_0 : i32, i32, i32
  }
}

</mosaic_0001>

<bundles_post_ra>
// kernel: tpu_custom_call.1
= control target key start
LH: loop header
LB: loop body
LE: loop exit
PB: predicated region body
PF: predicated region fallthrough
CT: control target
= control target key end

     0   :  { %s1264_s0 = inlined_call_operand.hbm [shape: f32[8,128], index: 0, kind: input, shape index: {}]   ;;  %s1265_s1 = inlined_call_operand.hbm [shape: bf16[4,3,128,128], index: 1, kind: input, shape index: {}]   ;;  %s1266_s2 = inlined_call_operand.hbm [shape: f32[4,3,1,128], index: 2, kind: input, shape index: {}]   ;;  %s1267_s3 = inlined_call_operand.hbm [shape: f32[4,8,128], index: 3, kind: output, shape index: {}]  }
   0x1   :  { %1281 = sst [smem:[#allocation18_spill]] %s1265_s1 }
   0x2   :  { %1282 = sst [smem:[#allocation19_spill]] %s1267_s3 }
   0x3   :  { %8 = vsyncpa [#allocation3], 0 }
   0x4   :  { %9 = vsyncpa [#allocation6], 0 }
   0x5   :  { %11 = vsyncpa [#allocation6 + $0x1], 0 }
   0x6   :  { %12 = vsyncpa [#allocation4], 0 }
   0x7   :  { %14 = vsyncpa [#allocation4 + $0x1], 0  ;;  %s941_s12 = smov 0   ;;  %s943_s13 = smov 0  }
   0x8   :  { %s945_s14 = smov 0   ;;  %s947_s15 = smov 0  }
   0x9   :  { %s949_s16 = smov 0   ;;  %s951_s17 = smov 0  }
   0xa   :  { %s953_s18 = smov 0   ;;  %s955_s19 = smov 0  }
   0xb   :  { %s957_s20 = smov 0   ;;  %s959_s21 = smov 0  }
   0xc   :  { %s961_s22 = smov 0  }
   0xd LB: > { %1283 = sst [smem:[#allocation12_spill]] %s903_s20  ;;  %s29_s23 = sadd.s32 1, %s903_s20  ;;  %s911_s22 = sphi %s961_s22, %s20_s22   ;;  %s907_s21 = sphi %s959_s21, %s1313_s21   ;;  %s903_s20 = sphi %s957_s20, %s1312_s20   ;;  %s899_s19 = sphi %s955_s19, %s1311_s19   ;;  %s895_s18 = sphi %s953_s18, %s1310_s18   ;;  %s891_s17 = sphi %s951_s17, %s1319_s17   ;;  %s887_s16 = sphi %s949_s16, %s1318_s16   ;;  %s883_s15 = sphi %s947_s15, %s1317_s15   ;;  %s879_s14 = sphi %s945_s14, %s1316_s14   ;;  %s875_s13 = sphi %s943_s13, %s1315_s13   ;;  %s871_s12 = sphi %s941_s12, %s1314_s12  }
   0xe   : > { %1284 = sst [smem:[#allocation13_spill]] %s907_s21  ;;  %s32_s24 = sadd.s32 1, %s907_s21 }
   0xf   : > { %p30_p0 = scmp.ge.s32.totalorder %s29_s23, 3  ;;  %s62_s25 = sadd.s32 1, %s891_s17 }
  0x10   : > { %p69_p1 = scmp.ne.s32.totalorder %s891_s17, %s887_s16  ;;  %p70_p2 = scmp.eq.s32.totalorder %s911_s22, 0 }
  0x11   : > { %s1321_s23 = smov (%p30_p0, %s29_s23), 0  ;;  %s1323_s24 = smov (!%p30_p0, %s32_s24), %s907_s21 }
  0x12   : > { %1285 = sst [smem:[#allocation14_spill]] %s1321_s23  ;;  %s58_s26 = ssub.s32 %s903_s20, %s1321_s23 }
  0x13   : > { %p1007_p3 = por %p70_p2, %p69_p1  ;;  %p34_p4 = scmp.ge.s32.totalorder %s1323_s24, 4 }
  0x14   : > { %p593_p5 = scmp.lt.s32.totalorder %s911_s22, 12  ;;  %s164_s28 = sand.u32 1, %s911_s22  }
  0x15   : > { %s1325_s24 = smov (%p34_p4, %s1323_s24), 0  ;;  %s1271_s29 = sand.u32 1, %s891_s17  }
  0x16   : > { %1287 = sst [smem:[#allocation15_spill]] %s1325_s24  ;;  %s1018_s30 = ssub.s32 %s907_s21, %s1325_s24 }
  0x17   : > { %s514_s4 = sshll.u32 %s1271_s29, 6  ;;  %s59_s5 = sor.u32 %s58_s26, %s1018_s30 }
  0x18   : > { %p60_p6 = scmp.eq.s32.totalorder %s59_s5, 0  ;;  %s515_s6 = sshll.u32 %s903_s20, 4 }
  0x19   : > { %s565_s7 = smul.u32 48, %s907_s21  ;;  %s168_s8 = scalar_lea.vmem [#allocation5], %s514_s4 }
  0x1a   : > { %s177_s9 = sshll.u32 %s168_s8, 4  ;;  %p1034_p7 = pnand %p593_p5, %p1007_p3  ;;  %s1028_s9 = int_to_ptr.vmem [resolvable:$true] %s177_s9 }
  0x1b   : > { %s1026_s10 = scalar_select %p60_p6, %s891_s17, %s62_s25  }
  0x1c   : > { %s174_s11 = sadd.s32 %s565_s7, %s515_s6  ;;  %s1290_s1 = sld [smem:[#allocation18_spill]] }
  0x1d   : > { %1288 = sst [smem:[#allocation16_spill]] %s1026_s10  ;;  %s516_s23 = sshll.u32 %s174_s11, 6 }
  0x1e   : > { %s1289_s24 = scalar_select %p1034_p7, 1, 0 }
  0x1f   : > { %s1043_s25 = scalar_lea.sflag [#allocation6], %s164_s28  ;;  %p1274_p9 = pneg %p1034_p7 }
  0x22   : > { %s1041_s26 = scalar_lea.hbm %s1290_s1, %s516_s23  ;;  %s702_s29 = scalar_lea.hbm %s1290_s1, 12288 }
  0x23   : > { %s697_s4 = scalar_lea.hbm %s1041_s26, 1024  ;;  %p703_p12 = scmp.lt.u32.totalorder %s1041_s26, %s1290_s1 }
  0x24   : > { %p698_p8 = scmp.ne.s32.totalorder %s1041_s26, %s697_s4  ;;  %p704_p13 = scmp.lt.u32.totalorder %s702_s29, %s697_s4 }
  0x25   : > { %p706_p1 = scmp.lt.u32.totalorder %s697_s4, %s1041_s26 }
  0x26   : > { %p700_p10 = pnand %p1274_p9, %p698_p8  ;;  %p705_p0 = por %p704_p13, %p703_p12 }
  0x28   : > { %p701_p11 = pneg %p700_p10  ;;  %p707_p2 = por %p706_p1, %p705_p0 }
  0x2a   : > { %p708_p3 = pnand %p707_p2, %p701_p11 }
  0x2c   : > { %711 = shalt.err (!%p708_p3)
}
  0x2d   : > { %s712_s28 = scalar_lea.vmem %s1028_s9, 1024  ;;  %s913_s6 = smov [#allocation5]  }
  0x2e   : > { %p713_p4 = scmp.ne.s32.totalorder %s1028_s9, %s712_s28  ;;  %s717_s7 = sshll.u32 %s913_s6, 4  ;;  %s718_s7 = int_to_ptr.vmem [resolvable:$false] %s717_s7 }
  0x2f   : > { %s719_s8 = scalar_lea.vmem %s718_s7, 2048  ;;  %p720_p8 = scmp.lt.s32.totalorder %s1028_s9, %s718_s7 }
  0x30   : > { %p715_p5 = pnand %p713_p4, %p1274_p9  ;;  %p721_p10 = scmp.lt.s32.totalorder %s719_s8, %s712_s28 }
  0x32   : > { %p716_p6 = pneg %p715_p5  ;;  %p722_p12 = por %p721_p10, %p720_p8 }
  0x34   : > { %p723_p13 = pnand %p722_p12, %p716_p6 }
  0x36   : > { %726 = shalt.err (!%p723_p13)
}
  0x37   : > { %s914_s11 = smov 64   ;;  %s915_s4 = smov 4  }
  0x38   : > { %584 = dma.hbm_to_vmem [thread:$0]  (!%p1034_p7), %s1041_s26, 1024, %s1028_s9, %s1043_s25, %s914_s11, %s914_s11, %s915_s4  }
  0x39   : > { %s1072_s27 = sadd.s32 4294967295, %s911_s22   ;;  %s510_s3 = sadd.s32 4294967294, %s911_s22  }
  0x3a   : > { %p75_p11 = scmp.ne.s32.totalorder %s887_s16, %s883_s15  ;;  %p1273_p0 = scmp.eq.s32.totalorder %s1072_s27, 0 }
  0x3b   : > { %p114_p1 = scmp.eq.s32.totalorder %s1018_s30, 0  ;;  %s116_s29 = sadd.s32 1, %s879_s14 }
  0x3c   : > { %p1082_p2 = por %p1273_p0, %p75_p11  ;;  %p126_p3 = scmp.ne.s32.totalorder %s879_s14, %s875_s13 }
  0x3d   : > { %s1089_s5 = scalar_select %p114_p1, %s879_s14, %s116_s29  }
  0x3e   : > { %s1291_s23 = scalar_select %p1082_p2, 1, 0 }
  0x3f   : > { %1292 = sst [smem:[#allocation17_spill]] %s1089_s5  ;;  %p127_p4 = scmp.eq.s32.totalorder %s1072_s27, 11 }
  0x40   : > { %p132_p5 = scmp.ne.s32.totalorder %s875_s13, %s871_s12  ;;  %p133_p6 = scmp.eq.s32.totalorder %s510_s3, 11 }
  0x41   : > { %p511_p8 = scmp.ge.s32.totalorder %s911_s22, 1  ;;  %p1095_p10 = por %p127_p4, %p126_p3 }
  0x42   : > { %p140_p12 = scmp.lt.s32.totalorder %s911_s22, 13  ;;  %p1100_p13 = por %p133_p6, %p132_p5 }
  0x43   : > { %s1293_s15 = scalar_select %p1095_p10, 1, 0 }
  0x44   : > { %s1294_s30 = scalar_select %p1100_p13, 1, 0 }
  0x45   : > { %p1104_p11 = pnand %p511_p8, %p140_p12  ;;  %s916_s26 = smov [#allocation2]  }
  0x46   : > { %s153_s28 = sshll.u32 %s916_s26, 4  ;;  %s566_s6 = smul.u32 3, %s907_s21  ;;  %s154_s28 = int_to_ptr.vmem [resolvable:$true] %s153_s28 }
  0x47   : > { %s1295_s9 = scalar_select %p1104_p11, 1, 0 }
  0x48   : > { %p577_p1 = pneg %p1104_p11  ;;  %s1296_s7 = sand.u32 1, %s891_s17  }
  0x49   : > { %s190_s8 = scalar_lea.vmem [#allocation7], %s1296_s7  ;;  %s195_s3 = sadd.s32 %s903_s20, %s566_s6 }
  0x4a   : > { %s199_s11 = sshll.u32 %s190_s8, 4  ;;  %p1115_p3 = pnand %p577_p1, %p1273_p0  ;;  %s1120_s11 = int_to_ptr.vmem [resolvable:$true] %s199_s11 }
  0x4b   : > { %s517_s29 = sshll.u32 %s195_s3, 4  ;;  %s727_s26 = scalar_lea.hbm %s1264_s0, 128 }
  0x4c   : > { %p728_p4 = scmp.ne.s32.totalorder %s1264_s0, %s727_s26  ;;  %p729_p5 = pneg %p1115_p3 }
  0x4d   : > { %p734_p12 = scmp.lt.u32.totalorder %s727_s26, %s1264_s0 }
  0x4e   : > { %p730_p6 = pnand %p729_p5, %p728_p4 }
  0x50   : > { %p731_p8 = pneg %p730_p6 }
  0x52   : > { %p736_p1 = pnand %p734_p12, %p731_p8 }
  0x54   : > { %739 = shalt.err (!%p736_p1)
}
  0x55   : > { %s740_s6 = scalar_lea.vmem %s154_s28, 128  ;;  %p748_p10 = scmp.lt.s32.totalorder %s154_s28, %s154_s28 }
  0x56   : > { %p741_p0 = scmp.ne.s32.totalorder %s154_s28, %s740_s6  ;;  %p749_p2 = scmp.lt.s32.totalorder %s740_s6, %s740_s6 }
  0x58   : > { %p743_p9 = pnand %p741_p0, %p729_p5  ;;  %p750_p11 = por %p749_p2, %p748_p10 }
  0x5a   : > { %p744_p13 = pneg %p743_p9 }
  0x5c   : > { %p751_p7 = pnand %p750_p11, %p744_p13 }
  0x5e   : > { %754 = shalt.err (!%p751_p7)
}
  0x5f   : > { %580 = dma.hbm_to_vmem [thread:$0]  (!%p1115_p3), %s1264_s0, 128, %s154_s28, [#allocation3]  }
  0x60   : > { %s197_s3 = scalar_lea.hbm %s1266_s2, %s517_s29  ;;  %p1298_p0 = scmp.ne.s32.totalorder %s1289_s24, 0 }
  0x61   : > { %s755_s26 = scalar_lea.hbm %s197_s3, 16  ;;  %s760_s6 = scalar_lea.hbm %s1266_s2, 192 }
  0x62   : > { %p756_p4 = scmp.ne.s32.totalorder %s197_s3, %s755_s26  ;;  %p1299_p9 = pneg %p1298_p0 }
  0x63   : > { %p761_p7 = scmp.lt.u32.totalorder %s197_s3, %s1266_s2  ;;  %p762_p2 = scmp.lt.u32.totalorder %s760_s6, %s755_s26 }
  0x64   : > { %p758_p5 = pnand %p756_p4, %p1299_p9  ;;  %p764_p13 = scmp.lt.u32.totalorder %s755_s26, %s197_s3 }
  0x65   : > { %p763_p10 = por %p762_p2, %p761_p7 }
  0x66   : > { %p759_p6 = pneg %p758_p5 }
  0x67   : > { %p765_p11 = por %p764_p13, %p763_p10 }
  0x69   : > { %p766_p3 = pnand %p765_p11, %p759_p6 }
  0x6b   : > { %769 = shalt.err (!%p766_p3)
}
  0x6c   : > { %s770_s28 = scalar_lea.vmem %s1120_s11, 16  ;;  %p1300_p12 = pmov %p1299_p9 }
  0x6d   : > { %p771_p8 = scmp.ne.s32.totalorder %s1120_s11, %s770_s28  ;;  %s917_s29 = smov [#allocation7]  }
  0x6e   : > { %s775_s1 = sshll.u32 %s917_s29, 4  ;;  %s776_s1 = int_to_ptr.vmem [resolvable:$false] %s775_s1 }
  0x6f   : > { %p773_p1 = pnand %p771_p8, %p1300_p12  ;;  %s777_s20 = scalar_lea.vmem %s776_s1, 32 }
  0x70   : > { %p778_p9 = scmp.lt.s32.totalorder %s1120_s11, %s776_s1  ;;  %p779_p5 = scmp.lt.s32.totalorder %s777_s20, %s770_s28 }
  0x71   : > { %p774_p4 = pneg %p773_p1 }
  0x72   : > { %p780_p7 = por %p779_p5, %p778_p9 }
  0x74   : > { %p781_p2 = pnand %p780_p7, %p774_p4 }
  0x76   : > { %784 = shalt.err (!%p781_p2)
}
  0x77   : > { %587 = dma.hbm_to_vmem [thread:$0]  (!%p1298_p0), %s197_s3, 16, %s1120_s11, %s1043_s25  }
  0x78   : > { %p1301_p6 = scmp.ne.s32.totalorder %s1295_s9, 0 }
  0x79   : > { %p1302_p10 = scmp.eq.s32.totalorder (!%p1301_p6), %s1072_s27, 0 }
  0x7a   : > { %208 = sbr.rel (%p1301_p6) target bundleno = 409 (0x199), region = 32 }
  0x81   : > { %858 = dma.done.wait (%p1302_p10), [#allocation3], 128   ;;  %p1303_p13 = pmov %p1302_p10 }
  0x82   : > { %s214_s21 = sand.u32 1, %s1072_s27   ;;  %s216_s10 = sand.u32 1, %s887_s16  }
  0x83   : > { %860 = vsyncadd (%p1303_p13), [#allocation3], 4294967168  ;;  %s520_s5 = sshll.u32 %s216_s10, 6  ;;  %s215_s26 = scalar_lea.sflag [#allocation6], %s214_s21 }
  0x84   : > { %s1168_s24 = scalar_lea.vmem [#allocation5], %s520_s5  ;;  %p1304_p11 = scmp.ne.s32.totalorder %s1291_s23, 0 }
  0x86   : > { %862 = dma.done.wait (%p1304_p11), %s215_s26, 1040  }
  0x87   : > { %864 = vsyncadd (%p1304_p11), %s215_s26, 4294966256  ;;  %s250_s25 = sand.u32 1, %s875_s13   ;;  %s1177_s11 = scalar_lea.vmem [#allocation7], %s216_s10 }
  0x88   : > { %s521_s9 = sshll.u32 %s250_s25, 3  ;;  %p522_p0 = scmp.ne.s32.totalorder %s895_s18, 0 }
  0x89   : > { %s1179_s3 = scalar_lea.vmem [#allocation8], %s521_s9  ;;  %v258_v0 = vld [vmem:[#allocation2] sm:$0xff] (!%p522_p0) }
  0x8a   : > { %257 = sbr.rel (%p522_p0) target bundleno = 145 (0x91), region = 48  ;;  %259 = vst [vmem:[%s1179_s3] sm:$0xff] (!%p522_p0), %v258_v0 }
  0x91 PF: > { %v689_v1 = vld [vmem:[%s1168_s24] sm:$0xff]   ;;  %v918_v2 = vmov 0.0   ;;  %v690_v3 = vld [vmem:[%s1168_s24 + $0x8] sm:$0xff]   ;;  %vm919_vm0 = vmmov 0   ;;  %v691_v4 = vld [vmem:[%s1168_s24 + $0x10] sm:$0xff]   ;;  %p373_p3 = scmp.lt.s32.totalorder %s895_s18, 2 }
  0x92   : > { %545 = vmatprep.subr.bf16.mxu0 %v918_v2  ;;  %561 = vmatprep.mubr.msk.bf16.mxu0 %vm919_vm0, %v918_v2  ;;  %v692_v5 = vld [vmem:[%s1168_s24 + $0x18] sm:$0xff]   ;;  %v693_v6 = vld [vmem:[%s1168_s24 + $0x20] sm:$0xff]   ;;  %v694_v7 = vld [vmem:[%s1168_s24 + $0x28] sm:$0xff]   ;;  %s533_s23 = sshll.u32 %s899_s19, 7  ;;  %s394_s7 = sshll.u32 %s1179_s3, 4  ;;  %s1201_s7 = int_to_ptr.vmem [resolvable:$true] %s394_s7 }
  0x93   : > { %546 = vmatpush3.bf16.msra.mxu0 %v689_v1  ;;  %v695_v8 = vld [vmem:[%s1168_s24 + $0x30] sm:$0xff]   ;;  %v696_v9 = vld [vmem:[%s1168_s24 + $0x38] sm:$0xff]   ;;  %s375_s27 = scalar_select %p373_p3, 1, 0 }
  0x94   : > { %547 = vmatprep.subr.bf16.mxu0 %v918_v2  ;;  %v260_v10 = vld [vmem:[%s1179_s3] sm:$0xff]  ;;  %v523_v12 = vld [vmem:[%s1177_s11] ss:$0 sm:$0xff]  ;;  %s1305_s4 = sld [smem:[#allocation19_spill]]  ;;  %s381_s18 = scalar_lea.sflag [#allocation4], %s250_s25 }
  0x95   : > { %v278_v11 = vpack.c.bf16 %v260_v10, %v260_v10  ;;  %v376_v13 = vstv %s375_s27  ;;  %s785_s19 = scalar_lea.vmem %s1201_s7, 128  ;;  %p1306_p12 = scmp.ne.s32.totalorder %s1293_s15, 0 }
  0x96   : > { %vm377_vm1 = vcmp.eq.s32.totalorder %v376_v13, 1  ;;  %p786_p8 = scmp.ne.s32.totalorder %s1201_s7, %s785_s19  ;;  %s920_s29 = smov [#allocation8]  }
  0x97   : > { %548 = vmatpush3.bf16.msra.mxu0 %v690_v3  ;;  %s789_s1 = sshll.u32 %s920_s29, 4  ;;  %s790_s1 = int_to_ptr.vmem [resolvable:$false] %s789_s1 }
  0x98   : > { %549 = vmatprep.subr.bf16.mxu0 %v918_v2  ;;  %p787_p1 = pnand %p786_p8, %p1306_p12  ;;  %s791_s20 = scalar_lea.vmem %s790_s1, 256 }
  0x99   : > { %p792_p9 = scmp.lt.s32.totalorder %s1201_s7, %s790_s1  ;;  %p793_p5 = scmp.lt.s32.totalorder %s791_s20, %s785_s19 }
  0x9a   : > { %s1199_s28 = scalar_lea.hbm %s1305_s4, %s533_s23  ;;  %p788_p4 = pneg %p787_p1 }
  0x9b   : > { %550 = vmatpush3.bf16.msra.mxu0 %v691_v4  ;;  %p794_p7 = por %p793_p5, %p792_p9 }
  0x9c   : > { %551 = vmatprep.subr.bf16.mxu0 %v918_v2 }
  0x9d   : > { %p795_p2 = pnand %p794_p7, %p788_p4 }
  0x9f   : > { %552 = vmatpush3.bf16.msra.mxu0 %v692_v5 }
  0xa0   : > { %553 = vmatprep.subr.bf16.mxu0 %v918_v2 }
  0xa3   : > { %554 = vmatpush3.bf16.msra.mxu0 %v693_v6 }
  0xa4   : > { %555 = vmatprep.subr.bf16.mxu0 %v918_v2 }
  0xa7   : > { %556 = vmatpush3.bf16.msra.mxu0 %v694_v7 }
  0xa8   : > { %557 = vmatprep.subr.bf16.mxu0 %v918_v2 }
  0xab   : > { %558 = vmatpush3.bf16.msra.mxu0 %v695_v8 }
  0xac   : > { %559 = vmatprep.subr.bf16.mxu0 %v918_v2 }
  0xaf   : > { %560 = vmatpush3.bf16.msra.mxu0 %v696_v9 }
  0xb2   : > { %562 = vmatmul.mubr.bf16.vlgmr.msra.gmra.mrb[0].mxu0 %v278_v11 }
 0x185   : > { %v367_v14 = vpop.f32.mrb[0].mxu0 }
 0x186   : > { %v368_v15 = vadd.f32 %v523_v12, %v367_v14  ;;  %v563_v16 = vpop.f32.mrb[1].mxu0 }
 0x187   : > { %v370_v17 = vpop.f32.mrb[2].mxu0 }
 0x188   : > { %v374_v18 = vmax.f32 %v368_v15, 0.0  ;;  %v564_v19 = vpop.f32.mrb[3].mxu0 }
 0x18a   : > { %v378_v20 = vsel %vm377_vm1, %v374_v18, %v368_v15 }
 0x18b   : > { %379 = vst [vmem:[%s1179_s3] sm:$0xff] %v378_v20 }
 0x18c   : > { %798 = shalt.err (!%p795_p2)
}
 0x18d   : > { %s799_s21 = scalar_lea.hbm %s1199_s28, 128  ;;  %s803_s26 = scalar_lea.hbm %s1305_s4, 512 }
 0x18e   : > { %p800_p6 = scmp.ne.s32.totalorder %s1199_s28, %s799_s21  ;;  %p804_p11 = scmp.lt.u32.totalorder %s1199_s28, %s1305_s4 }
 0x18f   : > { %p805_p0 = scmp.lt.u32.totalorder %s803_s26, %s799_s21  ;;  %p807_p8 = scmp.lt.u32.totalorder %s799_s21, %s1199_s28 }
 0x190   : > { %p801_p10 = pnand %p800_p6, %p1306_p12 }
 0x191   : > { %p806_p3 = por %p805_p0, %p804_p11 }
 0x192   : > { %p802_p13 = pneg %p801_p10 }
 0x193   : > { %p808_p1 = por %p807_p8, %p806_p3 }
 0x195   : > { %p809_p4 = pnand %p808_p1, %p802_p13 }
 0x197   : > { %812 = shalt.err (!%p809_p4)
}
 0x198   : > { %575 = dma.vmem_to_hbm [thread:$0]  (%p1306_p12), %s1201_s7, 128, %s1199_s28, %s381_s18  }
 0x199 PF: > { %p595_p9 = scmp.ge.s32.totalorder %s911_s22, 2  ;;  %s406_s9 = sand.u32 1, %s871_s12  }
 0x19a   : > { %p1307_p5 = scmp.ne.s32.totalorder %s1294_s30, 0  ;;  %s407_s11 = scalar_lea.sflag [#allocation4], %s406_s9 }
 0x19c   : > { %p589_p7 = pnand %p595_p9, %p1307_p5 }
 0x19e   : > { %866 = dma.done.wait (!%p589_p7), %s407_s11, 128  }
 0x19f   : > { %868 = vsyncadd (!%p589_p7), %s407_s11, 4294967168  ;;  %s20_s22 = sadd.s32 1, %s911_s22   ;;  %s1308_s15 = sld [smem:[#allocation17_spill]] }
 0x1a0   : > { %p17_p2 = scmp.ge.s32.totalorder %s20_s22, 14   ;;  %s1309_s3 = sld [smem:[#allocation16_spill]] }
 0x1a1   : > { %s1310_s18 = sld [smem:[#allocation12_spill]]  ;;  %s1311_s19 = sld [smem:[#allocation13_spill]] }
 0x1a2   : > { %s1312_s20 = sld [smem:[#allocation14_spill]]  ;;  %s1313_s21 = sld [smem:[#allocation15_spill]] }
 0x1a3   : > { %s1314_s12 = smov %s875_s13  ;;  %s1315_s13 = smov %s879_s14 }
 0x1a4   :  { %19 = sbr.rel (!%p17_p2) target bundleno = 13 (0xd), region = 97 }
 0x1a5   : > { %s1316_s14 = smov %s1308_s15  ;;  %s1317_s15 = smov %s887_s16 }
 0x1a6   : > { %s1318_s16 = smov %s891_s17  ;;  %s1319_s17 = smov %s1309_s3 }
 0x1ab   :  { %412 = vsyncpa [#allocation3], 1 }
 0x1ac   :  { %414 = vsyncpa [#allocation3 + $0x1], 1 }
 0x1ad   :  { %415 = vsyncpa [#allocation6], 1 }
 0x1ae   :  { %417 = vsyncpa [#allocation6 + $0x1], 1 }
 0x1af   :  { %418 = vsyncpa [#allocation4], 1 }
 0x1b0   :  { %420 = vsyncpa [#allocation4 + $0x1], 1 }

</bundles_post_ra>
